<compile_context>
chip_gen: v7x
topology: tpu7x:2x2x1
jax: 0.10.0
libtpu: 0.0.40
codegen_flags: <defaults>
</compile_context>

<pallas_src>
import functools

import jax
import jax.numpy as jnp
from jax import lax
from jax.experimental import pallas as pl
from jax.experimental.pallas import tpu as pltpu


# ----------------------------------------------------------------------------
# Pallas kernel: k x k stride-1 conv + bias on one (batch, row-band) tile
# ----------------------------------------------------------------------------
def _upsample_conv_band_kernel(x_ref, w_ref, b_ref, o_ref, *, k, tile_h, wout):
    # x_ref: (1, 1, tile_h + k - 1, W + 2*pad, Cin)  bf16, pre-padded band+halo
    # w_ref: (k*k, Cin, Cc)                          bf16 (VMEM-resident)
    # b_ref: (1, Cc)                                 f32
    # o_ref: (1, tile_h, wout, Cc)                   f32, Cc = out_ch*r^2 (lane-dense)
    cin = x_ref.shape[-1]
    cc = o_ref.shape[-1]
    xb = x_ref[0, 0]                                  # (band_h, Wp, Cin)

    acc = jnp.zeros((tile_h * wout, cc), jnp.float32)
    for dy in range(k):
        for dx in range(k):
            # Static slices; reshape is layout-free when wout % 8 == 0.
            xs = xb[dy:dy + tile_h, dx:dx + wout, :].reshape(tile_h * wout, cin)
            acc = acc + jnp.dot(xs, w_ref[dy * k + dx],
                                preferred_element_type=jnp.float32)
    acc = acc + b_ref[...]
    o_ref[...] = acc.reshape(1, tile_h, wout, cc).astype(o_ref.dtype)


def _largest_divisor_at_most(n, cap):
    for d in range(min(n, cap), 0, -1):
        if n % d == 0:
            return d
    return n


# ----------------------------------------------------------------------------
# Wrapper: pallas_call for the conv, fused pixel-shuffle/NCHW transpose after
# ----------------------------------------------------------------------------
def pixel_shuffle_pack(x_nchw, w_hwio, b, *, scale_factor, upsample_kernel,
                       tile_h=None):
    """x_nchw: (N, Cin, H, W); w_hwio: (k, k, Cin, out_ch*r^2); b: (out_ch*r^2,)."""
    N, Cin, H, W = x_nchw.shape
    k = upsample_kernel
    pad = (k - 1) // 2
    Hout = H + 2 * pad - k + 1
    Wout = W + 2 * pad - k + 1
    r = scale_factor
    Cc = w_hwio.shape[-1]                  # out_channels * r^2
    Cout = Cc // (r * r)

    # Row-band size: pick so the matmul M = tile_h*Wout is >= ~256 and the bf16
    # input band + f32 output band fit scoped VMEM at real resolutions.
    if tile_h is None:
        tile_h = _largest_divisor_at_most(Hout, 64)
    assert Hout % tile_h == 0, (Hout, tile_h)
    n_bands = Hout // tile_h
    band_h = tile_h + k - 1

    # One-time wrapper-side prep (input is 4x smaller than the output):
    # NHWC, bf16 MXU operands, zero-pad once, materialize overlapping row bands
    # so all BlockSpecs stay plain Blocked tiles (no in-kernel halo handling).
    x = jnp.transpose(x_nchw, (0, 2, 3, 1)).astype(jnp.bfloat16)
    xp = jnp.pad(x, ((0, 0), (pad, pad), (pad, pad), (0, 0)))
    x_bands = jnp.stack(
        [xp[:, i * tile_h:i * tile_h + band_h] for i in range(n_bands)], axis=1)
    w_taps = w_hwio.reshape(k * k, Cin, Cc).astype(jnp.bfloat16)
    b2d = b.reshape(1, Cc).astype(jnp.float32)

    kernel = functools.partial(_upsample_conv_band_kernel,
                               k=k, tile_h=tile_h, wout=Wout)
    y = pl.pallas_call(
        kernel,
        out_shape=jax.ShapeDtypeStruct((N, Hout, Wout, Cc), jnp.float32),
        grid_spec=pltpu.PrefetchScalarGridSpec(
            num_scalar_prefetch=0,
            grid=(N, n_bands),
            in_specs=[
                # banded + haloed input: one band per grid step (auto-pipelined)
                pl.BlockSpec((1, 1, band_h, W + 2 * pad, Cin),
                             lambda n, h: (n, h, 0, 0, 0)),
                # weights/bias: constant index maps -> stay VMEM-resident
                pl.BlockSpec((k * k, Cin, Cc), lambda n, h: (0, 0, 0)),
                pl.BlockSpec((1, Cc), lambda n, h: (0, 0)),
            ],
            out_specs=pl.BlockSpec((1, tile_h, Wout, Cc),
                                   lambda n, h: (n, h, 0, 0)),
        ),
        compiler_params=pltpu.CompilerParams(
            dimension_semantics=("parallel", "parallel"),
            vmem_limit_bytes=32 * 1024 * 1024),
    )(x_bands, w_taps, b2d)

    # pixel_shuffle fused with NHWC->NCHW: channel cc = c*r^2 + i*r + j,
    # out[n, c, h*r+i, w*r+j] = y[n, h, w, cc]  -> single XLA transpose.
    if r > 1:
        y = y.reshape(N, Hout, Wout, Cout, r, r)
        y = jnp.transpose(y, (0, 3, 1, 4, 2, 5))   # (N, C, Hout, r, Wout, r)
        return y.reshape(N, Cout, Hout * r, Wout * r)
    return jnp.transpose(y, (0, 3, 1, 2))


# ----------------------------------------------------------------------------
# Deterministic parameter init (kaiming-normal, as in init_weights('kaiming'))
# ----------------------------------------------------------------------------
def init_params(key, in_channels, out_channels, scale_factor, upsample_kernel):
    k = upsample_kernel
    cc = out_channels * scale_factor * scale_factor
    kw, kb = jax.random.split(key)
    fan_in = k * k * in_channels
    w = jax.random.normal(kw, (k, k, in_channels, cc), jnp.float32)
    w = w * jnp.sqrt(2.0 / fan_in)
    b = 0.01 * jax.random.normal(kb, (cc,), jnp.float32)
    return w, b


# ----------------------------------------------------------------------------
# Pure-JAX reference (lax.conv + standard pixel_shuffle).  Uses the same
# bf16-rounded operands as the kernel (f32 accumulation) so the check is
# apples-to-apples with the bf16 MXU path.
# ----------------------------------------------------------------------------
def reference_forward(x_nchw, w_hwio, b, *, scale_factor, upsample_kernel):
    k = upsample_kernel
    pad = (k - 1) // 2
    xb = x_nchw.astype(jnp.bfloat16).astype(jnp.float32)
    wb = w_hwio.astype(jnp.bfloat16).astype(jnp.float32)
    y = lax.conv_general_dilated(
        xb, wb, window_strides=(1, 1),
        padding=[(pad, pad), (pad, pad)],
        dimension_numbers=("NCHW", "HWIO", "NCHW"),
        precision=lax.Precision.HIGHEST)
    y = y + b[None, :, None, None]
    if scale_factor > 1:
        r = scale_factor
        N, CC, Hh, Ww = y.shape
        C = CC // (r * r)
        y = y.reshape(N, C, r, r, Hh, Ww)
        y = jnp.transpose(y, (0, 1, 4, 2, 5, 3))
        y = y.reshape(N, C, Hh * r, Ww * r)
    return y


# ----------------------------------------------------------------------------
if __name__ == "__main__":
    key = jax.random.PRNGKey(0)
    k_x, k_p = jax.random.split(key)

    batch, in_channels, H, W = 2, 32, 16, 16
    out_channels, scale_factor, upsample_kernel = 32, 2, 3

    x = jax.random.normal(k_x, (batch, in_channels, H, W), jnp.float32)
    w, b = init_params(k_p, in_channels, out_channels, scale_factor,
                       upsample_kernel)

    fwd = jax.jit(functools.partial(pixel_shuffle_pack,
                                    scale_factor=scale_factor,
                                    upsample_kernel=upsample_kernel,
                                    tile_h=8))
    out = jax.block_until_ready(fwd(x, w, b))

    ref = jax.block_until_ready(
        reference_forward(x, w, b, scale_factor=scale_factor,
                          upsample_kernel=upsample_kernel))

    assert out.shape == (batch, out_channels, H * scale_factor,
                         W * scale_factor), out.shape
    err = float(jnp.max(jnp.abs(out - ref)))
    assert err < 2e-2, err

    print("KERNEL_OK")
</pallas_src>

<mosaic_0001>
module attributes {stable_mosaic.version = 11 : i64} {
  func.func @_upsample_conv_band_kernel(%arg0: i32, %arg1: i32, %arg2: memref<1x1x10x18x32xbf16, #tpu.memory_space<vmem>>, %arg3: memref<9x32x128xbf16, #tpu.memory_space<vmem>>, %arg4: memref<1x128xf32, #tpu.memory_space<vmem>>, %arg5: memref<1x8x16x128xf32, #tpu.memory_space<vmem>>) attributes {dimension_semantics = [#tpu.dimension_semantics<parallel>, #tpu.dimension_semantics<parallel>], iteration_bounds = array<i64: 2, 2>, scalar_prefetch = 0 : i64, scratch_operands = 0 : i64, tpu.core_type = #tpu.core_type<tc>, window_params = [{transform_indices = @transform_0, window_bounds = array<i64: 1, 1, 10, 18, 32>}, {pipeline_mode = #tpu.pipeline_mode<synchronous>, transform_indices = @transform_1, window_bounds = array<i64: 9, 32, 128>}, {pipeline_mode = #tpu.pipeline_mode<synchronous>, transform_indices = @transform_2, window_bounds = array<i64: 1, 128>}, {transform_indices = @transform_3, window_bounds = array<i64: 1, 8, 16, 128>}]} {
    %c0 = arith.constant 0 : index
    %c0_0 = arith.constant 0 : index
    %c0_1 = arith.constant 0 : index
    %c0_2 = arith.constant 0 : index
    %c0_3 = arith.constant 0 : index
    %0 = vector.load %arg2[%c0, %c0_0, %c0_1, %c0_2, %c0_3] : memref<1x1x10x18x32xbf16, #tpu.memory_space<vmem>>, vector<1x1x10x18x32xbf16>
    %1 = vector.shape_cast %0 : vector<1x1x10x18x32xbf16> to vector<10x18x32xbf16>
    %cst = arith.constant 0.000000e+00 : f32
    %2 = vector.broadcast %cst : f32 to vector<128x128xf32>
    %3 = vector.extract_strided_slice %1 {offsets = [0, 0, 0], sizes = [8, 16, 32], strides = [1, 1, 1]} : vector<10x18x32xbf16> to vector<8x16x32xbf16>
    %4 = vector.shape_cast %3 : vector<8x16x32xbf16> to vector<128x32xbf16>
    %c0_4 = arith.constant 0 : index
    %c0_5 = arith.constant 0 : index
    %c0_6 = arith.constant 0 : index
    %5 = vector.load %arg3[%c0_4, %c0_5, %c0_6] : memref<9x32x128xbf16, #tpu.memory_space<vmem>>, vector<1x32x128xbf16>
    %6 = vector.shape_cast %5 : vector<1x32x128xbf16> to vector<32x128xbf16>
    %cst_7 = arith.constant dense<0.000000e+00> : vector<128x128xf32>
    %7 = tpu.matmul %4, %6, %cst_7 {dimension_numbers = #tpu.dot_dimension_numbers<[1], [0], [0], [1], [0, 0, 1, 1], [], []>} : vector<128x32xbf16>, vector<32x128xbf16>, vector<128x128xf32> -> vector<128x128xf32>
    %8 = arith.addf %2, %7 : vector<128x128xf32>
    %9 = vector.extract_strided_slice %1 {offsets = [0, 1, 0], sizes = [8, 16, 32], strides = [1, 1, 1]} : vector<10x18x32xbf16> to vector<8x16x32xbf16>
    %10 = vector.shape_cast %9 : vector<8x16x32xbf16> to vector<128x32xbf16>
    %c1 = arith.constant 1 : index
    %c0_8 = arith.constant 0 : index
    %c0_9 = arith.constant 0 : index
    %11 = vector.load %arg3[%c1, %c0_8, %c0_9] : memref<9x32x128xbf16, #tpu.memory_space<vmem>>, vector<1x32x128xbf16>
    %12 = vector.shape_cast %11 : vector<1x32x128xbf16> to vector<32x128xbf16>
    %cst_10 = arith.constant dense<0.000000e+00> : vector<128x128xf32>
    %13 = tpu.matmul %10, %12, %cst_10 {dimension_numbers = #tpu.dot_dimension_numbers<[1], [0], [0], [1], [0, 0, 1, 1], [], []>} : vector<128x32xbf16>, vector<32x128xbf16>, vector<128x128xf32> -> vector<128x128xf32>
    %14 = arith.addf %8, %13 : vector<128x128xf32>
    %15 = vector.extract_strided_slice %1 {offsets = [0, 2, 0], sizes = [8, 16, 32], strides = [1, 1, 1]} : vector<10x18x32xbf16> to vector<8x16x32xbf16>
    %16 = vector.shape_cast %15 : vector<8x16x32xbf16> to vector<128x32xbf16>
    %c2 = arith.constant 2 : index
    %c0_11 = arith.constant 0 : index
    %c0_12 = arith.constant 0 : index
    %17 = vector.load %arg3[%c2, %c0_11, %c0_12] : memref<9x32x128xbf16, #tpu.memory_space<vmem>>, vector<1x32x128xbf16>
    %18 = vector.shape_cast %17 : vector<1x32x128xbf16> to vector<32x128xbf16>
    %cst_13 = arith.constant dense<0.000000e+00> : vector<128x128xf32>
    %19 = tpu.matmul %16, %18, %cst_13 {dimension_numbers = #tpu.dot_dimension_numbers<[1], [0], [0], [1], [0, 0, 1, 1], [], []>} : vector<128x32xbf16>, vector<32x128xbf16>, vector<128x128xf32> -> vector<128x128xf32>
    %20 = arith.addf %14, %19 : vector<128x128xf32>
    %21 = vector.extract_strided_slice %1 {offsets = [1, 0, 0], sizes = [8, 16, 32], strides = [1, 1, 1]} : vector<10x18x32xbf16> to vector<8x16x32xbf16>
    %22 = vector.shape_cast %21 : vector<8x16x32xbf16> to vector<128x32xbf16>
    %c3 = arith.constant 3 : index
    %c0_14 = arith.constant 0 : index
    %c0_15 = arith.constant 0 : index
    %23 = vector.load %arg3[%c3, %c0_14, %c0_15] : memref<9x32x128xbf16, #tpu.memory_space<vmem>>, vector<1x32x128xbf16>
    %24 = vector.shape_cast %23 : vector<1x32x128xbf16> to vector<32x128xbf16>
    %cst_16 = arith.constant dense<0.000000e+00> : vector<128x128xf32>
    %25 = tpu.matmul %22, %24, %cst_16 {dimension_numbers = #tpu.dot_dimension_numbers<[1], [0], [0], [1], [0, 0, 1, 1], [], []>} : vector<128x32xbf16>, vector<32x128xbf16>, vector<128x128xf32> -> vector<128x128xf32>
    %26 = arith.addf %20, %25 : vector<128x128xf32>
    %27 = vector.extract_strided_slice %1 {offsets = [1, 1, 0], sizes = [8, 16, 32], strides = [1, 1, 1]} : vector<10x18x32xbf16> to vector<8x16x32xbf16>
    %28 = vector.shape_cast %27 : vector<8x16x32xbf16> to vector<128x32xbf16>
    %c4 = arith.constant 4 : index
    %c0_17 = arith.constant 0 : index
    %c0_18 = arith.constant 0 : index
    %29 = vector.load %arg3[%c4, %c0_17, %c0_18] : memref<9x32x128xbf16, #tpu.memory_space<vmem>>, vector<1x32x128xbf16>
    %30 = vector.shape_cast %29 : vector<1x32x128xbf16> to vector<32x128xbf16>
    %cst_19 = arith.constant dense<0.000000e+00> : vector<128x128xf32>
    %31 = tpu.matmul %28, %30, %cst_19 {dimension_numbers = #tpu.dot_dimension_numbers<[1], [0], [0], [1], [0, 0, 1, 1], [], []>} : vector<128x32xbf16>, vector<32x128xbf16>, vector<128x128xf32> -> vector<128x128xf32>
    %32 = arith.addf %26, %31 : vector<128x128xf32>
    %33 = vector.extract_strided_slice %1 {offsets = [1, 2, 0], sizes = [8, 16, 32], strides = [1, 1, 1]} : vector<10x18x32xbf16> to vector<8x16x32xbf16>
    %34 = vector.shape_cast %33 : vector<8x16x32xbf16> to vector<128x32xbf16>
    %c5 = arith.constant 5 : index
    %c0_20 = arith.constant 0 : index
    %c0_21 = arith.constant 0 : index
    %35 = vector.load %arg3[%c5, %c0_20, %c0_21] : memref<9x32x128xbf16, #tpu.memory_space<vmem>>, vector<1x32x128xbf16>
    %36 = vector.shape_cast %35 : vector<1x32x128xbf16> to vector<32x128xbf16>
    %cst_22 = arith.constant dense<0.000000e+00> : vector<128x128xf32>
    %37 = tpu.matmul %34, %36, %cst_22 {dimension_numbers = #tpu.dot_dimension_numbers<[1], [0], [0], [1], [0, 0, 1, 1], [], []>} : vector<128x32xbf16>, vector<32x128xbf16>, vector<128x128xf32> -> vector<128x128xf32>
    %38 = arith.addf %32, %37 : vector<128x128xf32>
    %39 = vector.extract_strided_slice %1 {offsets = [2, 0, 0], sizes = [8, 16, 32], strides = [1, 1, 1]} : vector<10x18x32xbf16> to vector<8x16x32xbf16>
    %40 = vector.shape_cast %39 : vector<8x16x32xbf16> to vector<128x32xbf16>
    %c6 = arith.constant 6 : index
    %c0_23 = arith.constant 0 : index
    %c0_24 = arith.constant 0 : index
    %41 = vector.load %arg3[%c6, %c0_23, %c0_24] : memref<9x32x128xbf16, #tpu.memory_space<vmem>>, vector<1x32x128xbf16>
    %42 = vector.shape_cast %41 : vector<1x32x128xbf16> to vector<32x128xbf16>
    %cst_25 = arith.constant dense<0.000000e+00> : vector<128x128xf32>
    %43 = tpu.matmul %40, %42, %cst_25 {dimension_numbers = #tpu.dot_dimension_numbers<[1], [0], [0], [1], [0, 0, 1, 1], [], []>} : vector<128x32xbf16>, vector<32x128xbf16>, vector<128x128xf32> -> vector<128x128xf32>
    %44 = arith.addf %38, %43 : vector<128x128xf32>
    %45 = vector.extract_strided_slice %1 {offsets = [2, 1, 0], sizes = [8, 16, 32], strides = [1, 1, 1]} : vector<10x18x32xbf16> to vector<8x16x32xbf16>
    %46 = vector.shape_cast %45 : vector<8x16x32xbf16> to vector<128x32xbf16>
    %c7 = arith.constant 7 : index
    %c0_26 = arith.constant 0 : index
    %c0_27 = arith.constant 0 : index
    %47 = vector.load %arg3[%c7, %c0_26, %c0_27] : memref<9x32x128xbf16, #tpu.memory_space<vmem>>, vector<1x32x128xbf16>
    %48 = vector.shape_cast %47 : vector<1x32x128xbf16> to vector<32x128xbf16>
    %cst_28 = arith.constant dense<0.000000e+00> : vector<128x128xf32>
    %49 = tpu.matmul %46, %48, %cst_28 {dimension_numbers = #tpu.dot_dimension_numbers<[1], [0], [0], [1], [0, 0, 1, 1], [], []>} : vector<128x32xbf16>, vector<32x128xbf16>, vector<128x128xf32> -> vector<128x128xf32>
    %50 = arith.addf %44, %49 : vector<128x128xf32>
    %51 = vector.extract_strided_slice %1 {offsets = [2, 2, 0], sizes = [8, 16, 32], strides = [1, 1, 1]} : vector<10x18x32xbf16> to vector<8x16x32xbf16>
    %52 = vector.shape_cast %51 : vector<8x16x32xbf16> to vector<128x32xbf16>
    %c8 = arith.constant 8 : index
    %c0_29 = arith.constant 0 : index
    %c0_30 = arith.constant 0 : index
    %53 = vector.load %arg3[%c8, %c0_29, %c0_30] : memref<9x32x128xbf16, #tpu.memory_space<vmem>>, vector<1x32x128xbf16>
    %54 = vector.shape_cast %53 : vector<1x32x128xbf16> to vector<32x128xbf16>
    %cst_31 = arith.constant dense<0.000000e+00> : vector<128x128xf32>
    %55 = tpu.matmul %52, %54, %cst_31 {dimension_numbers = #tpu.dot_dimension_numbers<[1], [0], [0], [1], [0, 0, 1, 1], [], []>} : vector<128x32xbf16>, vector<32x128xbf16>, vector<128x128xf32> -> vector<128x128xf32>
    %56 = arith.addf %50, %55 : vector<128x128xf32>
    %c0_32 = arith.constant 0 : index
    %c0_33 = arith.constant 0 : index
    %57 = vector.load %arg4[%c0_32, %c0_33] : memref<1x128xf32, #tpu.memory_space<vmem>>, vector<1x128xf32>
    %58 = vector.broadcast %57 : vector<1x128xf32> to vector<128x128xf32>
    %59 = arith.addf %56, %58 : vector<128x128xf32>
    %60 = vector.shape_cast %59 : vector<128x128xf32> to vector<1x8x16x128xf32>
    %c0_34 = arith.constant 0 : index
    %c0_35 = arith.constant 0 : index
    %c0_36 = arith.constant 0 : index
    %c0_37 = arith.constant 0 : index
    %61 = vector.load %arg5[%c0_34, %c0_35, %c0_36, %c0_37] : memref<1x8x16x128xf32, #tpu.memory_space<vmem>>, vector<1x8x16x128xf32>
    tpu.vector_store %arg5[%c0_34, %c0_35, %c0_36, %c0_37], %60 {strides = array<i32>} : memref<1x8x16x128xf32, #tpu.memory_space<vmem>>, vector<1x8x16x128xf32>,
    return
  }
  func.func @transform_0(%arg0: i32, %arg1: i32) -> (i32, i32, i32, i32, i32) {
    %c0_i32 = arith.constant 0 : i32
    %c0_i32_0 = arith.constant 0 : i32
    %c0_i32_1 = arith.constant 0 : i32
    %c0_i32_2 = arith.constant 0 : i32
    return %arg0, %arg1, %c0_i32, %c0_i32_0, %c0_i32_1 : i32, i32, i32, i32, i32
  }
  func.func @transform_1(%arg0: i32, %arg1: i32) -> (i32, i32, i32) {
    %c0_i32 = arith.constant 0 : i32
    %c0_i32_0 = arith.constant 0 : i32
    %c0_i32_1 = arith.constant 0 : i32
    %c0_i32_2 = arith.constant 0 : i32
    return %c0_i32, %c0_i32_0, %c0_i32_1 : i32, i32, i32
  }
  func.func @transform_2(%arg0: i32, %arg1: i32) -> (i32, i32) {
    %c0_i32 = arith.constant 0 : i32
    %c0_i32_0 = arith.constant 0 : i32
    %c0_i32_1 = arith.constant 0 : i32
    return %c0_i32, %c0_i32_0 : i32, i32
  }
  func.func @transform_3(%arg0: i32, %arg1: i32) -> (i32, i32, i32, i32) {
    %c0_i32 = arith.constant 0 : i32
    %c0_i32_0 = arith.constant 0 : i32
    %c0_i32_1 = arith.constant 0 : i32
    return %arg0, %arg1, %c0_i32, %c0_i32_0 : i32, i32, i32, i32
  }
}

</mosaic_0001>

<bundles_post_ra>
// kernel: pixel_shuffle_pack.1
= control target key start
LH: loop header
LB: loop body
LE: loop exit
PB: predicated region body
PF: predicated region fallthrough
CT: control target
= control target key end

     0   :  { %8 = vsyncpa [#allocation3], 0  ;;  %s2821_s12 = smov 0   ;;  %s2823_s13 = smov 0   ;;  %s3523_s0 = inlined_call_operand.vmem [shape: bf16[2,2,10,18,32], index: 0, kind: input, shape index: {}]   ;;  %s3524_s1 = inlined_call_operand.vmem [shape: bf16[9,32,128], index: 1, kind: input, shape index: {}]   ;;  %s3525_s2 = inlined_call_operand.hbm [shape: f32[1,128], index: 2, kind: input, shape index: {}]   ;;  %s3526_s3 = inlined_call_operand.vmem [shape: f32[2,16,16,128], index: 3, kind: output, shape index: {}]  }
   0x1   :  { %s2825_s14 = smov 0   ;;  %s2827_s15 = smov 0  }
   0x2   :  { %s2829_s16 = smov 0  }
   0x3 LB: > { %s2068_s17 = sadd.s32 4294967295, %s2798_s16   ;;  %s23_s18 = sadd.s32 1, %s2790_s14  ;;  %s2798_s16 = sphi %s2829_s16, %s14_s16   ;;  %s2794_s15 = sphi %s2827_s15, %s3542_s15   ;;  %s2790_s14 = sphi %s2825_s14, %s3541_s14   ;;  %s2786_s13 = sphi %s2823_s13, %s3540_s13   ;;  %s2782_s12 = sphi %s2821_s12, %s3539_s12  }
   0x4   : > { %p24_p0 = scmp.ge.s32.totalorder %s23_s18, 2  ;;  %s26_s19 = sadd.s32 1, %s2794_s15 }
   0x5   : > { %p2070_p1 = scmp.ge.s32.totalorder %s2798_s16, 1  ;;  %p129_p2 = scmp.lt.s32.totalorder %s2798_s16, 5 }
   0x6   : > { %s3544_s18 = smov (%p24_p0, %s23_s18), 0  ;;  %s3546_s19 = smov (!%p24_p0, %s26_s19), %s2794_s15 }
   0x7   : > { %p2854_p3 = pnand %p2070_p1, %p129_p2  ;;  %p28_p4 = scmp.ge.s32.totalorder %s3546_s19, 2 }
   0x8   : > { %p2858_p5 = scmp.eq.s32.totalorder %s2068_s17, 0  ;;  %s2800_s22 = smov [#allocation2]  }
   0x9   : > { %s3530_s20 = scalar_select %p2854_p3, 1, 0 }
   0xa   : > { %s3531_s21 = scalar_select %p2858_p5, 1, 0 }
   0xb   : > { %p2653_p6 = pneg %p2854_p3  ;;  %s3548_s19 = smov (%p28_p4, %s3546_s19), 0 }
   0xc   : > { %s145_s23 = sshll.u32 %s2800_s22, 4  ;;  %s2728_s27 = scalar_lea.hbm %s3525_s2, 16  ;;  %s146_s23 = int_to_ptr.vmem [resolvable:$true] %s145_s23 }
   0xd   : > { %p2868_p7 = pnand %p2858_p5, %p2653_p6  ;;  %p2729_p8 = scmp.ne.s32.totalorder %s3525_s2, %s2728_s27 }
   0xe   : > { %p2735_p12 = scmp.lt.u32.totalorder %s2728_s27, %s3525_s2 }
   0xf   : > { %p2730_p9 = pneg %p2868_p7 }
  0x11   : > { %p2731_p10 = pnand %p2730_p9, %p2729_p8 }
  0x13   : > { %p2732_p11 = pneg %p2731_p10 }
  0x15   : > { %p2737_p13 = pnand %p2735_p12, %p2732_p11 }
  0x17   : > { %2740 = shalt.err (!%p2737_p13)
}
  0x18   : > { %s2741_s5 = scalar_lea.vmem %s146_s23, 16  ;;  %s2748_s6 = scalar_lea.vmem %s146_s23, 32 }
  0x19   : > { %p2742_p0 = scmp.ne.s32.totalorder %s146_s23, %s2741_s5  ;;  %p2749_p4 = scmp.lt.s32.totalorder %s146_s23, %s146_s23 }
  0x1a   : > { %p2750_p6 = scmp.lt.s32.totalorder %s2748_s6, %s2741_s5 }
  0x1b   : > { %p2744_p1 = pnand %p2742_p0, %p2730_p9 }
  0x1c   : > { %p2751_p5 = por %p2750_p6, %p2749_p4 }
  0x1d   : > { %p2745_p2 = pneg %p2744_p1 }
  0x1f   : > { %p2752_p3 = pnand %p2751_p5, %p2745_p2 }
  0x21   : > { %2755 = shalt.err (!%p2752_p3)
}
  0x22   : > { %2656 = dma.hbm_to_vmem [thread:$0]  (!%p2868_p7), %s3525_s2, 16, %s146_s23, [#allocation3]  }
  0x23   : > { %p3533_p8 = scmp.ne.s32.totalorder %s3530_s20, 0 }
  0x24   : > { %p3534_p10 = scmp.ne.s32.totalorder (!%p3533_p8), %s3531_s21, 0 }
  0x25   : > { %170 = sbr.rel (%p3533_p8) target bundleno = 434 (0x1b2), region = 32 }
  0x2c   : > { %2777 = dma.done.wait (%p3534_p10), [#allocation3], 16  }
  0x2d   : > { %2779 = vsyncadd (%p3534_p10), [#allocation3], 4294967280  ;;  %p203_p3 = scmp.lt.s32.totalorder %s2786_s13, 1  ;;  %p205_p5 = scmp.lt.s32.totalorder %s2782_s12, 1  ;;  %vm258_vm0 = vsmask.f32 3328 }
  0x2e   : > { %vm259_vm1 = vsmask.f32 7440  ;;  %v2700_v0 = vld [vmem:[%s3524_s1 + $0x10] sm:$0xff]   ;;  %v2907_v1 = vld [vmem:[%s3524_s1 + $0x40] sm:$0xff]   ;;  %v2702_v2 = vld [vmem:[%s3524_s1 + $0x18] sm:$0xff]   ;;  %vm494_vm3 = vcmask 261120  }
  0x2f   : > { %s3550_s13 = smov (!%p203_p3, %s2786_s13), 1  ;;  %2335 = vmatprep.subr.bf16.mxu1 %v2700_v0  ;;  %2415 = vmatprep.subr.bf16.mxu0 %v2907_v1  ;;  %v2921_v3 = vld [vmem:[%s3524_s1 + $0x48] sm:$0xff]   ;;  %v2942_v12 = vld [vmem:[%s3524_s1] sm:$0xff]   ;;  %v2947_v13 = vld [vmem:[%s3524_s1 + $0x50] sm:$0xff]   ;;  %vm797_vm4 = vcmask 1042432   ;;  %vm798_vm5 = vcmask 1046532  }
  0x30   : > { %s206_s9 = scalar_select %p205_p5, %s2782_s12, 1  ;;  %2336 = vmatpush3.bf16.msra.mxu1 %v2700_v0  ;;  %2416 = vmatpush3.bf16.msra.mxu0 %v2907_v1  ;;  %vm2966_vm2 = vmor %vm258_vm0, %vm259_vm1 }
  0x31   : > { %s2648_s10 = smul.u32 60, %s3550_s13  ;;  %2337 = vmatprep.subr.bf16.mxu1 %v2702_v2  ;;  %2417 = vmatprep.subr.bf16.mxu0 %v2921_v3  ;;  %vm3051_vm6 = vmor %vm797_vm4, %vm798_vm5  ;;  %s2076_s20 = sshll.u32 %s2782_s12, 3 }
  0x32   : > { %s2647_s11 = smul.u32 30, %s206_s9  ;;  %p215_p7 = scmp.lt.s32.totalorder %s2076_s20, 15 }
  0x33   : > { %s2078_s22 = sshll.u32 %s3550_s13, 5 }
  0x34   : > { %s209_s21 = sadd.s32 %s2648_s10, %s2647_s11  ;;  %2338 = vmatpush3.bf16.msra.mxu1 %v2702_v2  ;;  %2418 = vmatpush3.bf16.msra.mxu0 %v2921_v3  ;;  %s3552_s20 = smov (!%p215_p7, %s2076_s20), 15 }
  0x35   : > { %s2075_s24 = sshll.u32 %s209_s21, 2  ;;  %2355 = vmatprep.subr.bf16.mxu1 %v2942_v12  ;;  %2435 = vmatprep.subr.bf16.mxu0 %v2947_v13  ;;  %s2077_s21 = sshll.u32 %s3552_s20, 1 }
  0x36   : > { %s2915_s29 = scalar_lea.vmem %s3523_s0, %s2075_s24  ;;  %s219_s23 = sadd.s32 %s2078_s22, %s2077_s21 }
  0x37   : > { %v2925_v4 = vld [vmem:[%s2915_s29] sm:$0xf]  ;;  %v2928_v5 = vld [vmem:[%s2915_s29 + $0x4] sm:$0xf]  ;;  %v2931_v6 = vld [vmem:[%s2915_s29 + $0x8] sm:$0x1] }
  0x38   : > { %v262_v7 = vshrl.u32 %v2925_v4, 16  ;;  %v265_v8 = vshll.u32 %v2925_v4, 16  ;;  %v271_v9 = vshll.u32 %v2928_v5, 16  ;;  %v275_v10 = vshrl.u32 %v2928_v5, 16  ;;  %v2950_v18 = vld [vmem:[%s2915_s29 + $0xc] sm:$0xf] }
  0x39   : > { %v281_v11 = vshll.u32 %v2931_v6, 16  ;;  %v2955_v20 = vld [vmem:[%s2915_s29 + $0x10] sm:$0xf]  ;;  %v2958_v21 = vld [vmem:[%s2915_s29 + $0x14] sm:$0x1]  ;;  %v286_v22 = vshrl.u32 %v2950_v18, 16 }
  0x3a   : > { %v264_v14 = vrot.slane %v262_v7, 4  ;;  %v267_v15 = vrot.slane %v265_v8, 5  ;;  %v273_v16 = vrot.slane %v271_v9, 5  ;;  %v277_v17 = vrot.slane %v275_v10, 4  ;;  %v2973_v31 = vld [vmem:[%s2915_s29 + $0x18] sm:$0xf] }
  0x3b   : > { %v283_v19 = vrot.slane %v281_v11, 5  ;;  %v289_v25 = vshll.u32 %v2950_v18, 16  ;;  %v295_v26 = vshll.u32 %v2955_v20, 16  ;;  %v288_v28 = vrot.slane %v286_v22, 4  ;;  %v2976_v36 = vld [vmem:[%s2915_s29 + $0x1c] sm:$0xf] }
  0x3c   : > { %v268_v23 = vor.u32 %v267_v15, %v264_v14  ;;  %v278_v24 = vor.u32 %v277_v17, %v273_v16  ;;  %v299_v29 = vshrl.u32 %v2955_v20, 16  ;;  %v305_v30 = vshll.u32 %v2958_v21, 16  ;;  %v2980_v40 = vld [vmem:[%s2915_s29 + $0x20] sm:$0x1]  ;;  %v2989_v46 = vld [vmem:[%s2915_s29 + $0x24] sm:$0xf] }
  0x3d   : > { %v291_v34 = vrot.slane %v289_v25, 5  ;;  %v297_v35 = vrot.slane %v295_v26, 5  ;;  %v812_v39 = vrot.slane %v2958_v21, 5  ;;  %v310_v41 = vshrl.u32 %v2973_v31, 16  ;;  %v2993_v51 = vld [vmem:[%s2915_s29 + $0x28] sm:$0xf] }
  0x3e   : > { %v269_v32 = vrot.slane %v268_v23, 4  ;;  %v279_v33 = vrot.slane %v278_v24, 4  ;;  %v301_v37 = vrot.slane %v299_v29, 4  ;;  %v307_v38 = vrot.slane %v305_v30, 5  ;;  %v3001_v60 = vld [vmem:[%s2915_s29 + $0x2c] sm:$0x1] }
  0x3f   : > { %v292_v44 = vor.u32 %v291_v34, %v288_v28  ;;  %v313_v45 = vshll.u32 %v2973_v31, 16  ;;  %v312_v49 = vrot.slane %v310_v41, 4  ;;  %v319_v50 = vshll.u32 %v2976_v36, 16  ;;  %v3006_v2 = vld [vmem:[%s2915_s29 + $0x30] sm:$0xf]  ;;  %v2708_v14 = vld [vmem:[%s3524_s1 + $0x8] sm:$0xff]  }
  0x40   : > { %v274_v42 = vsel %vm2966_vm2, %v269_v32, %v273_v16  ;;  %v284_v43 = vsel %vm2966_vm2, %v279_v33, %v283_v19  ;;  %v302_v48 = vor.u32 %v301_v37, %v297_v35  ;;  %v323_v54 = vshrl.u32 %v2976_v36, 16  ;;  %v3009_v7 = vld [vmem:[%s2915_s29 + $0x34] sm:$0xf]  ;;  %v3028_v34 = vld [vmem:[%s2915_s29 + $0x38] sm:$0x1]  ;;  %s2079_s24 = sshll.u32 %s219_s23, 3 }
  0x41   : > { %v2084_v47 = vcombine.low %v274_v42, %v284_v43  ;;  %v293_v52 = vrot.slane %v292_v44, 4  ;;  %v315_v53 = vrot.slane %v313_v45, 5  ;;  %v329_v55 = vshll.u32 %v2980_v40, 16  ;;  %v3036_v44 = vld [vmem:[%s2915_s29 + $0x3c] sm:$0xf]  ;;  %s3474_s26 = scalar_lea.vmem %s3526_s3, %s2079_s24 }
  0x42   : > { %v303_v56 = vrot.slane %v302_v48, 4  ;;  %v321_v57 = vrot.slane %v319_v50, 5  ;;  %v816_v58 = vrot.slane %v2976_v36, 5  ;;  %v819_v59 = vrot.slane %v2980_v40, 5  ;;  %v3046_v50 = vld [vmem:[%s3524_s1 + $0x20] sm:$0xff]  }
  0x43   : > { %2339 = vmatprep.mubr.msk.bf16.mxu1 %vm494_vm3, %v2084_v47  ;;  %v298_v61 = vsel %vm2966_vm2, %v293_v52, %v297_v35  ;;  %v316_v62 = vor.u32 %v315_v53, %v312_v49  ;;  %v325_v63 = vrot.slane %v323_v54, 4  ;;  %v331_v0 = vrot.slane %v329_v55, 5  ;;  %v2707_v47 = vld [vmem:[%s3524_s1 + $0x58] sm:$0xff]   ;;  %v3105_v21 = vld [vmem:[%s2915_s29 + $0x4c] sm:$0xf] }
  0x44   : > { %v308_v8 = vsel %vm2966_vm2, %v303_v56, %v307_v38  ;;  %v334_v9 = vshrl.u32 %v2989_v46, 16  ;;  %v337_v10 = vshll.u32 %v2989_v46, 16  ;;  %v343_v11 = vshll.u32 %v2993_v51, 16 }
  0x45   : > { %v2085_v15 = vcombine.low %v298_v61, %v308_v8  ;;  %v317_v16 = vrot.slane %v316_v62, 4  ;;  %v326_v17 = vor.u32 %v325_v63, %v321_v57  ;;  %v347_v19 = vshrl.u32 %v2993_v51, 16  ;;  %v3066_v63 = vld [vmem:[%s3524_s1 + $0x60] sm:$0xff]  }
  0x46   : > { %v336_v22 = vrot.slane %v334_v9, 4  ;;  %v339_v23 = vrot.slane %v337_v10, 5  ;;  %v345_v24 = vrot.slane %v343_v11, 5  ;;  %v353_v25 = vshll.u32 %v3001_v60, 16 }
  0x47   : > { %2419 = vmatprep.mubr.msk.bf16.mxu0 %vm494_vm3, %v2085_v15  ;;  %2340 = vmatmul.mubr.msk.bf16.vlgmr.msra.gmra.mrb[0].mxu1 %vm494_vm3, %v2085_v15  ;;  %v322_v26 = vsel %vm2966_vm2, %v317_v16, %v321_v57  ;;  %v327_v28 = vrot.slane %v326_v17, 4  ;;  %v349_v29 = vrot.slane %v347_v19, 4  ;;  %v358_v30 = vshrl.u32 %v3006_v2, 16  ;;  %v3076_v15 = vld [vmem:[%s2915_s29 + $0x44] sm:$0x1] }
  0x48   : > { %2356 = vmatpush3.bf16.msra.mxu1 %v2942_v12  ;;  %v340_v32 = vor.u32 %v339_v23, %v336_v22  ;;  %v355_v33 = vrot.slane %v353_v25, 5  ;;  %v361_v35 = vshll.u32 %v3006_v2, 16  ;;  %v367_v37 = vshll.u32 %v3009_v7, 16 }
  0x49   : > { %v332_v38 = vsel %vm2966_vm2, %v327_v28, %v331_v0  ;;  %v350_v41 = vor.u32 %v349_v29, %v345_v24  ;;  %v360_v42 = vrot.slane %v358_v30, 4  ;;  %v371_v43 = vshrl.u32 %v3009_v7, 16  ;;  %2357 = vmatprep.subr.bf16.mxu1 %v2708_v14  ;;  %v3069_v0 = vld [vmem:[%s2915_s29 + $0x40] sm:$0xf] }
  0x4a   : > { %v3038_v45 = vcombine.low %v322_v26, %v332_v38  ;;  %v341_v12 = vrot.slane %v340_v32, 4  ;;  %v363_v48 = vrot.slane %v361_v35, 5  ;;  %v369_v49 = vrot.slane %v367_v37, 5  ;;  %v3098_v32 = vld [vmem:[%s2915_s29 + $0x48] sm:$0xf] }
  0x4b   : > { %v351_v52 = vrot.slane %v350_v41, 4  ;;  %v373_v53 = vrot.slane %v371_v43, 4  ;;  %v377_v54 = vshll.u32 %v3028_v34, 16  ;;  %v2121_v56 = vrot.slane %v2950_v18, 9 }
  0x4c   : > { %2420 = vmatmul.mubr.msk.bf16.vlgmr.msra.gmra.mrb[0].mxu0 %vm494_vm3, %v3038_v45  ;;  %2343 = vmatprep.mubr.msk.bf16.mxu1 %vm494_vm3, %v3038_v45  ;;  %v346_v57 = vsel %vm2966_vm2, %v341_v12, %v345_v24  ;;  %v364_v61 = vor.u32 %v363_v48, %v360_v42  ;;  %v809_v62 = vrot.slane %v2955_v20, 5  ;;  %v382_v8 = vshrl.u32 %v3036_v44, 16  ;;  %v3112_v12 = vld [vmem:[%s2915_s29 + $0x50] sm:$0x1] }
  0x4d   : > { %2436 = vmatpush3.bf16.msra.mxu0 %v2947_v13  ;;  %v356_v9 = vsel %vm2966_vm2, %v351_v52, %v355_v33  ;;  %v374_v10 = vor.u32 %v373_v53, %v369_v49  ;;  %v379_v11 = vrot.slane %v377_v54, 5  ;;  %v385_v16 = vshll.u32 %v3036_v44, 16  ;;  %2358 = vmatpush3.bf16.msra.mxu1 %v2708_v14  ;;  %v3119_v53 = vld [vmem:[%s2915_s29 + $0x54] sm:$0xf] }
  0x4e   : > { %v3079_v17 = vcombine.low %v346_v57, %v356_v9  ;;  %2437 = vmatprep.subr.bf16.mxu0 %v2707_v47  ;;  %v365_v19 = vrot.slane %v364_v61, 4  ;;  %v810_v22 = vsel %vm3051_vm6, %v2121_v56, %v809_v62  ;;  %v811_v23 = vrot.slane %v809_v62, 4  ;;  %2375 = vmatprep.subr.bf16.mxu1 %v3046_v50 }
  0x4f   : > { %v375_v13 = vrot.slane %v374_v10, 4  ;;  %v384_v24 = vrot.slane %v382_v8, 4  ;;  %v387_v25 = vrot.slane %v385_v16, 5  ;;  %v391_v26 = vshll.u32 %v3069_v0, 16 }
  0x50   : > { %2423 = vmatprep.mubr.msk.bf16.mxu0 %vm494_vm3, %v3079_v17  ;;  %2344 = vmatmul.mubr.msk.bf16.gmra.mrb[4].mxu1 %vm494_vm3, %v3079_v17  ;;  %v370_v14 = vsel %vm2966_vm2, %v365_v19, %v369_v49  ;;  %v813_v28 = vsel %vm3051_vm6, %v811_v23, %v812_v39  ;;  %v395_v29 = vshrl.u32 %v3069_v0, 16  ;;  %v401_v30 = vshll.u32 %v3076_v15, 16 }
  0x51   : > { %v380_v33 = vsel %vm2966_vm2, %v375_v13, %v379_v11  ;;  %2438 = vmatpush3.bf16.msra.mxu0 %v2707_v47  ;;  %v3102_v35 = vcombine.low %v810_v22, %v813_v28  ;;  %v388_v37 = vor.u32 %v387_v25, %v384_v24  ;;  %v393_v38 = vrot.slane %v391_v26, 5  ;;  %v3145_v25 = vld [vmem:[%s2915_s29 + $0x58] sm:$0xf] }
  0x52   : > { %v3107_v41 = vcombine.low %v370_v14, %v380_v33  ;;  %2455 = vmatprep.subr.bf16.mxu0 %v3066_v63  ;;  %v397_v39 = vrot.slane %v395_v29, 4  ;;  %v403_v42 = vrot.slane %v401_v30, 5  ;;  %v2122_v43 = vrot.slane %v2973_v31, 9  ;;  %v3151_v14 = vld [vmem:[%s2915_s29 + $0x5c] sm:$0x1]  ;;  %v2712_v29 = vld [vmem:[%s3524_s1 + $0x68] sm:$0xff]  }
  0x53   : > { %v389_v48 = vrot.slane %v388_v37, 4  ;;  %v818_v47 = vrot.slane %v816_v58, 4  ;;  %v406_v49 = vshrl.u32 %v3098_v32, 16  ;;  %v409_v52 = vshll.u32 %v3098_v32, 16 }
  0x54   : > { %2424 = vmatmul.mubr.msk.bf16.gmra.mrb[4].mxu0 %vm494_vm3, %v3107_v41  ;;  %2347 = vmatprep.mubr.msk.bf16.mxu1 %vm494_vm3, %v3107_v41  ;;  %v398_v54 = vor.u32 %v397_v39, %v393_v38  ;;  %v817_v56 = vsel %vm3051_vm6, %v2122_v43, %v816_v58  ;;  %v415_v57 = vshll.u32 %v3105_v21, 16  ;;  %v419_v61 = vshrl.u32 %v3105_v21, 16 }
  0x55   : > { %2439 = vmatprep.mubr.msk.bf16.mxu0 %vm494_vm3, %v3102_v35  ;;  %v394_v62 = vsel %vm2966_vm2, %v389_v48, %v393_v38  ;;  %v820_v8 = vsel %vm3051_vm6, %v818_v47, %v819_v59  ;;  %v408_v9 = vrot.slane %v406_v49, 4  ;;  %v411_v10 = vrot.slane %v409_v52, 5 }
  0x56   : > { %v399_v58 = vrot.slane %v398_v54, 4  ;;  %v3139_v11 = vcombine.low %v817_v56, %v820_v8  ;;  %v417_v16 = vrot.slane %v415_v57, 5  ;;  %v421_v19 = vrot.slane %v419_v61, 4 }
  0x57   : > { %v412_v22 = vor.u32 %v411_v10, %v408_v9  ;;  %v425_v23 = vshll.u32 %v3112_v12, 16  ;;  %v2123_v13 = vrot.slane %v2989_v46, 9  ;;  %v823_v24 = vrot.slane %v2993_v51, 5 }
  0x58   : > { %v404_v40 = vsel %vm2966_vm2, %v399_v58, %v403_v42  ;;  %v422_v59 = vor.u32 %v421_v19, %v417_v16  ;;  %v826_v26 = vrot.slane %v3001_v60, 5  ;;  %v430_v28 = vshrl.u32 %v3119_v53, 16 }
  0x59   : > { %v3157_v30 = vcombine.low %v394_v62, %v404_v40  ;;  %v413_v33 = vrot.slane %v412_v22, 4  ;;  %v427_v37 = vrot.slane %v425_v23, 5  ;;  %v824_v38 = vsel %vm3051_vm6, %v2123_v13, %v823_v24  ;;  %v3186_v23 = vld [vmem:[%s3524_s1 + $0x70] sm:$0xff]  }
  0x5a   : > { %v423_v39 = vrot.slane %v422_v59, 4  ;;  %v825_v42 = vrot.slane %v823_v24, 4  ;;  %v432_v43 = vrot.slane %v430_v28, 4  ;;  %v433_v60 = vshll.u32 %v3119_v53, 16 }
  0x5b   : > { %2348 = vmatmul.mubr.msk.bf16.gmra.mrb[8].mxu1 %vm494_vm3, %v3157_v30  ;;  %v418_v48 = vsel %vm2966_vm2, %v413_v33, %v417_v16  ;;  %v439_v47 = vshll.u32 %v3145_v25, 16  ;;  %v443_v49 = vshrl.u32 %v3145_v25, 16  ;;  %v449_v52 = vshll.u32 %v3151_v14, 16 }
  0x5c   : > { %2440 = vmatmul.mubr.msk.bf16.vlgmr.msra.gmra.mrb[0].mxu0 %vm494_vm3, %v3139_v11  ;;  %v428_v54 = vsel %vm2966_vm2, %v423_v39, %v427_v37  ;;  %v827_v56 = vsel %vm3051_vm6, %v825_v42, %v826_v26  ;;  %v435_v57 = vrot.slane %v433_v60, 5  ;;  %v2124_v61 = vrot.slane %v3006_v2, 9 }
  0x5d   : > { %2456 = vmatpush3.bf16.msra.mxu0 %v3066_v63  ;;  %v3177_v62 = vcombine.low %v418_v48, %v428_v54  ;;  %v3179_v8 = vcombine.low %v824_v38, %v827_v56  ;;  %v441_v9 = vrot.slane %v439_v47, 5  ;;  %v445_v10 = vrot.slane %v443_v49, 4  ;;  %v3216_v49 = vld [vmem:[%s2915_s29 + $0x64] sm:$0xf] }
  0x5e   : > { %v436_v58 = vor.u32 %v435_v57, %v432_v43  ;;  %v451_v16 = vrot.slane %v449_v52, 5  ;;  %v830_v19 = vrot.slane %v3009_v7, 5  ;;  %v833_v22 = vrot.slane %v3028_v34, 5  ;;  %2457 = vmatprep.subr.bf16.mxu0 %v2712_v29 }
  0x5f   : > { %2351 = vmatprep.mubr.msk.bf16.mxu1 %vm494_vm3, %v3177_v62  ;;  %2443 = vmatprep.mubr.msk.bf16.mxu0 %vm494_vm3, %v3179_v8  ;;  %v446_v63 = vor.u32 %v445_v10, %v441_v9  ;;  %v2125_v13 = vrot.slane %v3036_v44, 9  ;;  %v837_v24 = vrot.slane %v3069_v0, 5  ;;  %v840_v40 = vrot.slane %v3076_v15, 5 }
  0x60   : > { %v437_v34 = vrot.slane %v436_v58, 4  ;;  %v831_v59 = vsel %vm3051_vm6, %v2124_v61, %v830_v19  ;;  %v832_v26 = vrot.slane %v830_v19, 4  ;;  %v844_v38 = vrot.slane %v3105_v21, 5 }
  0x61   : > { %v447_v28 = vrot.slane %v446_v63, 4  ;;  %v838_v33 = vsel %vm3051_vm6, %v2125_v13, %v837_v24  ;;  %v839_v37 = vrot.slane %v837_v24, 4  ;;  %2458 = vmatpush3.bf16.msra.mxu0 %v2712_v29  ;;  %v2126_v42 = vrot.slane %v3098_v32, 9 }
  0x62   : > { %v442_v39 = vsel %vm2966_vm2, %v437_v34, %v441_v9  ;;  %v834_v15 = vsel %vm3051_vm6, %v832_v26, %v833_v22  ;;  %v847_v43 = vrot.slane %v3112_v12, 5  ;;  %2475 = vmatprep.subr.bf16.mxu0 %v3186_v23  ;;  %v2102_v29 = vcombine.low %v2925_v4, %v2928_v5  ;;  %v3228_v9 = vld [vmem:[%s2915_s29 + $0x60] sm:$0xf]  ;;  %v3243_v22 = vld [vmem:[%s2915_s29 + $0x68] sm:$0x1] }
  0x63   : > { %v452_v60 = vsel %vm2966_vm2, %v447_v28, %v451_v16  ;;  %v3209_v48 = vcombine.low %v831_v59, %v834_v15  ;;  %v841_v47 = vsel %vm3051_vm6, %v839_v37, %v840_v40  ;;  %v846_v12 = vrot.slane %v844_v38, 4  ;;  %v3258_v28 = vld [vmem:[%s2915_s29 + $0x6c] sm:$0xf] }
  0x64   : > { %v3218_v52 = vcombine.low %v442_v39, %v452_v60  ;;  %v3220_v54 = vcombine.low %v838_v33, %v841_v47  ;;  %v2127_v56 = vrot.slane %v3119_v53, 9  ;;  %v851_v57 = vrot.slane %v3145_v25, 5  ;;  %v3273_v39 = vld [vmem:[%s2915_s29 + $0x70] sm:$0xf]  ;;  %v2716_v15 = vld [vmem:[%s3524_s1 + $0x28] sm:$0xff]  }
  0x65   : > { %2444 = vmatmul.mubr.msk.bf16.gmra.mrb[4].mxu0 %vm494_vm3, %v3209_v48  ;;  %v854_v61 = vrot.slane %v3151_v14, 5  ;;  %v845_v10 = vsel %vm3051_vm6, %v2126_v42, %v844_v38  ;;  %v848_v58 = vsel %vm3051_vm6, %v846_v12, %v847_v43  ;;  %v1335_v16 = vrot.slane %v3216_v49, 5 }
  0x66   : > { %2352 = vmatmul.mubr.msk.bf16.gmra.mrb[12].mxu1 %vm494_vm3, %v3218_v52  ;;  %2447 = vmatprep.mubr.msk.bf16.mxu0 %vm494_vm3, %v3220_v54  ;;  %v852_v14 = vsel %vm3051_vm6, %v2127_v56, %v851_v57  ;;  %v853_v19 = vrot.slane %v851_v57, 4  ;;  %v805_v63 = vrot.slane %v2931_v6, 5  ;;  %v3248_v13 = vcombine.low %v2950_v18, %v2955_v20  ;;  %v2721_v57 = vld [vmem:[%s3524_s1 + $0x30] sm:$0xff]  }
  0x67   : > { %2359 = vmatprep.mubr.msk.bf16.mxu1 %vm494_vm3, %v2102_v29  ;;  %v2180_v24 = vrot.slane %v3228_v9, 9  ;;  %v3251_v40 = vcombine.low %v845_v10, %v848_v58  ;;  %v2120_v59 = vrot.slane %v2925_v4, 9  ;;  %v802_v26 = vrot.slane %v2928_v5, 5 }
  0x68   : > { %v855_v34 = vsel %vm3051_vm6, %v853_v19, %v854_v61  ;;  %v1337_v6 = vrot.slane %v1335_v16, 4  ;;  %v1338_v18 = vrot.slane %v3243_v22, 5  ;;  %v1615_v20 = vshrl.u32 %v3258_v28, 16 }
  0x69   : > { %v3260_v33 = vcombine.low %v852_v14, %v855_v34  ;;  %v3266_v37 = vcombine.low %v2973_v31, %v2976_v36  ;;  %v3270_v38 = vsel %vm3051_vm6, %v2120_v59, %v802_v26  ;;  %v804_v4 = vrot.slane %v802_v26, 4  ;;  %v253_v36 = vld [vmem:[%s2915_s29 + $0x74] sm:$0x1] }
  0x6a   : > { %v1618_v5 = vshll.u32 %v3258_v28, 16  ;;  %v1628_v42 = vshrl.u32 %v3273_v39, 16  ;;  %v1617_v43 = vrot.slane %v1615_v20, 4  ;;  %v1336_v60 = vsel %vm3051_vm6, %v2180_v24, %v1335_v16 }
  0x6b   : > { %v806_v31 = vsel %vm3051_vm6, %v804_v4, %v805_v63  ;;  %v1339_v29 = vsel %vm3051_vm6, %v1337_v6, %v1338_v18  ;;  %v1624_v56 = vshll.u32 %v3273_v39, 16  ;;  %v1634_v10 = vshll.u32 %v253_v36, 16 }
  0x6c   : > { %v2132_v47 = vcombine.low %v3270_v38, %v806_v31  ;;  %v1620_v12 = vrot.slane %v1618_v5, 5  ;;  %v1630_v61 = vrot.slane %v1628_v42, 4  ;;  %v2226_v58 = vrot.slane %v3258_v28, 9 }
  0x6d   : > { %2448 = vmatmul.mubr.msk.bf16.gmra.mrb[8].mxu0 %vm494_vm3, %v3251_v40  ;;  %v3302_v16 = vcombine.low %v1336_v60, %v1339_v29  ;;  %v1626_v19 = vrot.slane %v1624_v56, 5  ;;  %v3307_v63 = vcombine.low %v2989_v46, %v2993_v51  ;;  %v3311_v24 = vcombine.low %v3006_v2, %v3009_v7 }
  0x6e   : > { %2360 = vmatmul.mubr.msk.bf16.vlgmr.msra.gmra.mrb[0].mxu1 %vm494_vm3, %v3248_v13  ;;  %2451 = vmatprep.mubr.msk.bf16.mxu0 %vm494_vm3, %v3260_v33  ;;  %v1621_v14 = vor.u32 %v1620_v12, %v1617_v43  ;;  %v1780_v34 = vrot.slane %v253_v36, 5  ;;  %v1636_v6 = vrot.slane %v1634_v10, 5  ;;  %v3339_v5 = vcombine.low %v3036_v44, %v3069_v0  ;;  %v2726_v44 = vld [vmem:[%s3524_s1 + $0x80] sm:$0xff]   ;;  %v2727_v43 = vld [vmem:[%s3524_s1 + $0x88] sm:$0xff]  }
  0x6f   : > { %2376 = vmatpush3.bf16.msra.mxu1 %v3046_v50  ;;  %2363 = vmatprep.mubr.msk.bf16.mxu1 %vm494_vm3, %v3266_v37  ;;  %v1777_v50 = vrot.slane %v3273_v39, 5  ;;  %v1631_v26 = vor.u32 %v1630_v61, %v1626_v19  ;;  %v3343_v55 = vcombine.low %v3098_v32, %v3105_v21  ;;  %v3362_v0 = vcombine.low %v3119_v53, %v3145_v25  ;;  %v2725_v21 = vld [vmem:[%s3524_s1 + $0x38] sm:$0xff]  }
  0x70   : > { %2377 = vmatprep.subr.bf16.mxu1 %v2716_v15  ;;  %v1622_v59 = vrot.slane %v1621_v14, 4  ;;  %v2154_v32 = vcombine.low %v3228_v9, %v3216_v49  ;;  %v2200_v53 = vcombine.low %v3258_v28, %v3273_v39  ;;  %v1176_v25 = vshll.u32 %v3228_v9, 16 }
  0x71   : > { %v3315_v18 = vsel %vm3051_vm6, %v2226_v58, %v1777_v50  ;;  %v1779_v20 = vrot.slane %v1777_v50, 4  ;;  %v1632_v51 = vrot.slane %v1631_v26, 4  ;;  %v1186_v28 = vshrl.u32 %v3216_v49, 16 }
  0x72   : > { %v1627_v46 = vsel %vm2966_vm2, %v1622_v59, %v1626_v19  ;;  %v1178_v42 = vrot.slane %v1176_v25, 5 }
  0x73   : > { %2378 = vmatpush3.bf16.msra.mxu1 %v2716_v15  ;;  %v3327_v2 = vsel %vm3051_vm6, %v1779_v20, %v1780_v34  ;;  %v1637_v7 = vsel %vm2966_vm2, %v1632_v51, %v1636_v6  ;;  %v2722_v15 = vld [vmem:[%s3524_s1 + $0x78] sm:$0xff]   ;;  %v1188_v36 = vrot.slane %v1186_v28, 4 }
  0x74   : > { %2395 = vmatprep.subr.bf16.mxu1 %v2721_v57  ;;  %v2231_v38 = vcombine.low %v3315_v18, %v3327_v2  ;;  %v3335_v4 = vcombine.low %v1627_v46, %v1637_v7 }
  0x75   : > { %2452 = vmatmul.mubr.msk.bf16.gmra.mrb[12].mxu0 %vm494_vm3, %v3302_v16 }
  0x76   : > { %2364 = vmatmul.mubr.msk.bf16.gmra.mrb[4].mxu1 %vm494_vm3, %v3307_v63  ;;  %2459 = vmatprep.mubr.msk.bf16.mxu0 %vm494_vm3, %v3266_v37 }
  0x77   : > { %2367 = vmatprep.mubr.msk.bf16.mxu1 %vm494_vm3, %v3311_v24 }
  0x7d   : > { %2460 = vmatmul.mubr.msk.bf16.vlgmr.msra.gmra.mrb[0].mxu0 %vm494_vm3, %v3307_v63 }
  0x7e   : > { %2368 = vmatmul.mubr.msk.bf16.gmra.mrb[8].mxu1 %vm494_vm3, %v3339_v5  ;;  %2476 = vmatpush3.bf16.msra.mxu0 %v3186_v23  ;;  %v1182_v23 = vshll.u32 %v3216_v49, 16 }
  0x7f   : > { %2371 = vmatprep.mubr.msk.bf16.mxu1 %vm494_vm3, %v3343_v55  ;;  %2463 = vmatprep.mubr.msk.bf16.mxu0 %vm494_vm3, %v3311_v24 }
  0x80   : > { %2477 = vmatprep.subr.bf16.mxu0 %v2722_v15  ;;  %v1184_v31 = vrot.slane %v1182_v23, 5 }
  0x82   : > { %2478 = vmatpush3.bf16.msra.mxu0 %v2722_v15  ;;  %v1189_v49 = vor.u32 %v1188_v36, %v1184_v31 }
  0x83   : > { %2495 = vmatprep.subr.bf16.mxu0 %v2726_v44 }
  0x84   : > { %v1190_v29 = vrot.slane %v1189_v49, 4 }
  0x85   : > { %2464 = vmatmul.mubr.msk.bf16.gmra.mrb[4].mxu0 %vm494_vm3, %v3339_v5 }
  0x86   : > { %2372 = vmatmul.mubr.msk.bf16.gmra.mrb[12].mxu1 %vm494_vm3, %v3362_v0  ;;  %2467 = vmatprep.mubr.msk.bf16.mxu0 %vm494_vm3, %v3343_v55 }
  0x87   : > { %2379 = vmatprep.mubr.msk.bf16.mxu1 %vm494_vm3, %v2132_v47 }
  0x8d   : > { %2468 = vmatmul.mubr.msk.bf16.gmra.mrb[8].mxu0 %vm494_vm3, %v3362_v0 }
  0x8e   : > { %2380 = vmatmul.mubr.msk.bf16.vlgmr.msra.gmra.mrb[0].mxu1 %vm494_vm3, %v3102_v35  ;;  %2471 = vmatprep.mubr.msk.bf16.mxu0 %vm494_vm3, %v2154_v32  ;;  %v1173_v35 = vshrl.u32 %v3228_v9, 16  ;;  %v1192_v9 = vshll.u32 %v3243_v22, 16 }
  0x8f   : > { %2396 = vmatpush3.bf16.msra.mxu1 %v2721_v57  ;;  %2383 = vmatprep.mubr.msk.bf16.mxu1 %vm494_vm3, %v3139_v11 }
  0x90   : > { %2397 = vmatprep.subr.bf16.mxu1 %v2725_v21  ;;  %v1175_v39 = vrot.slane %v1173_v35, 4  ;;  %v1194_v47 = vrot.slane %v1192_v9, 5 }
  0x93   : > { %2398 = vmatpush3.bf16.msra.mxu1 %v2725_v21 }
  0x94   : > { %2515 = vmatprep.subr.bf16.mxu1 %v2907_v1 }
  0x95   : > { %2472 = vmatmul.mubr.msk.bf16.gmra.mrb[12].mxu0 %vm494_vm3, %v2200_v53 }
  0x96   : > { %2384 = vmatmul.mubr.msk.bf16.gmra.mrb[4].mxu1 %vm494_vm3, %v3179_v8  ;;  %2479 = vmatprep.mubr.msk.bf16.mxu0 %vm494_vm3, %v3038_v45  ;;  %v1179_v45 = vor.u32 %v1178_v42, %v1175_v39 }
  0x97   : > { %2387 = vmatprep.mubr.msk.bf16.mxu1 %vm494_vm3, %v3209_v48 }
  0x98   : > { %v1180_v60 = vrot.slane %v1179_v45, 4 }
  0x9d   : > { %2480 = vmatmul.mubr.msk.bf16.vlgmr.msra.gmra.mrb[0].mxu0 %vm494_vm3, %v3079_v17  ;;  %v1185_v17 = vsel %vm2966_vm2, %v1180_v60, %v1184_v31 }
  0x9e   : > { %2388 = vmatmul.mubr.msk.bf16.gmra.mrb[8].mxu1 %vm494_vm3, %v3220_v54  ;;  %2496 = vmatpush3.bf16.msra.mxu0 %v2726_v44 }
  0x9f   : > { %2391 = vmatprep.mubr.msk.bf16.mxu1 %vm494_vm3, %v3251_v40  ;;  %2483 = vmatprep.mubr.msk.bf16.mxu0 %vm494_vm3, %v3107_v41  ;;  %v1195_v41 = vsel %vm2966_vm2, %v1190_v29, %v1194_v47 }
  0xa0   : > { %2497 = vmatprep.subr.bf16.mxu0 %v2727_v43  ;;  %v2169_v22 = vcombine.low %v1185_v17, %v1195_v41 }
  0xa2   : > { %2498 = vmatpush3.bf16.msra.mxu0 %v2727_v43 }
  0xa5   : > { %2484 = vmatmul.mubr.msk.bf16.gmra.mrb[4].mxu0 %vm494_vm3, %v3157_v30 }
  0xa6   : > { %2392 = vmatmul.mubr.msk.bf16.gmra.mrb[12].mxu1 %vm494_vm3, %v3260_v33  ;;  %2487 = vmatprep.mubr.msk.bf16.mxu0 %vm494_vm3, %v3177_v62 }
  0xa7   : > { %2399 = vmatprep.mubr.msk.bf16.mxu1 %vm494_vm3, %v3248_v13 }
  0xad   : > { %2488 = vmatmul.mubr.msk.bf16.gmra.mrb[8].mxu0 %vm494_vm3, %v3218_v52 }
  0xae   : > { %2400 = vmatmul.mubr.msk.bf16.vlgmr.msra.gmra.mrb[0].mxu1 %vm494_vm3, %v3266_v37  ;;  %2491 = vmatprep.mubr.msk.bf16.mxu0 %vm494_vm3, %v2169_v22 }
  0xaf   : > { %2517 = vmatpush3.bf16.msra.mxu1 %v2907_v1  ;;  %2403 = vmatprep.mubr.msk.bf16.mxu1 %vm494_vm3, %v3307_v63 }
  0xb0   : > { %2516 = vmatprep.subr.bf16.mxu1 %v2921_v3 }
  0xb3   : > { %2518 = vmatpush3.bf16.msra.mxu1 %v2921_v3 }
  0xb5   : > { %2492 = vmatmul.mubr.msk.bf16.gmra.mrb[12].mxu0 %vm494_vm3, %v3335_v4 }
  0xb6   : > { %2404 = vmatmul.mubr.msk.bf16.gmra.mrb[4].mxu1 %vm494_vm3, %v3311_v24  ;;  %2499 = vmatprep.mubr.msk.bf16.mxu0 %vm494_vm3, %v3139_v11 }
  0xb7   : > { %2407 = vmatprep.mubr.msk.bf16.mxu1 %vm494_vm3, %v3339_v5 }
  0xbd   : > { %2500 = vmatmul.mubr.msk.bf16.vlgmr.msra.gmra.mrb[0].mxu0 %vm494_vm3, %v3179_v8 }
  0xbe   : > { %2408 = vmatmul.mubr.msk.bf16.gmra.mrb[8].mxu1 %vm494_vm3, %v3343_v55  ;;  %2503 = vmatprep.mubr.msk.bf16.mxu0 %vm494_vm3, %v3209_v48 }
  0xbf   : > { %2411 = vmatprep.mubr.msk.bf16.mxu1 %vm494_vm3, %v3362_v0 }
  0xc5   : > { %2504 = vmatmul.mubr.msk.bf16.gmra.mrb[4].mxu0 %vm494_vm3, %v3220_v54  ;;  %v3469_v54 = vld [vmem:[#allocation2] ss:$0 sm:$0xff] }
  0xc6   : > { %2412 = vmatmul.mubr.msk.bf16.gmra.mrb[12].mxu1 %vm494_vm3, %v2154_v32  ;;  %2507 = vmatprep.mubr.msk.bf16.mxu0 %vm494_vm3, %v3251_v40 }
  0xc7   : > { %2427 = vmatprep.mubr.msk.bf16.mxu1 %vm494_vm3, %v3157_v30 }
  0xcd   : > { %2508 = vmatmul.mubr.msk.bf16.gmra.mrb[8].mxu0 %vm494_vm3, %v3260_v33 }
  0xce   : > { %2428 = vmatmul.mubr.msk.bf16.vlgmr.msra.gmra.mrb[8].mxu1 %vm494_vm3, %v3177_v62  ;;  %2511 = vmatprep.mubr.msk.bf16.mxu0 %vm494_vm3, %v3302_v16 }
  0xcf   : > { %2431 = vmatprep.mubr.msk.bf16.mxu1 %vm494_vm3, %v3218_v52 }
  0xd5   : > { %2512 = vmatmul.mubr.msk.bf16.gmra.mrb[12].mxu0 %vm494_vm3, %v2231_v38 }
  0xd6   : > { %2432 = vmatmul.mubr.msk.bf16.gmra.mrb[12].mxu1 %vm494_vm3, %v2169_v22 }
 0x181   : > { %v2401_v1 = vpop.f32.mrb[0].mxu1 }
 0x182   : > { %v1093_v3 = vpop.f32.mrb[1].mxu1 }
 0x183   : > { %v2402_v27 = vpop.f32.mrb[2].mxu1 }
 0x184   : > { %v1096_v11 = vpop.f32.mrb[3].mxu1 }
 0x189   : > { %v2405_v30 = vpop.f32.mrb[4].mxu1 }
 0x18a   : > { %v1109_v62 = vpop.f32.mrb[5].mxu1 }
 0x18b   : > { %v2406_v8 = vpop.f32.mrb[6].mxu1 }
 0x18c   : > { %v1112_v48 = vpop.f32.mrb[7].mxu1 }
 0x190   : > { %v2501_v52 = vpop.f32.mrb[0].mxu0 }
 0x191   : > { %v2519_v13 = vadd.f32 %v2501_v52, %v2401_v1  ;;  %v1839_v40 = vpop.f32.mrb[1].mxu0 }
 0x192   : > { %v2520_v33 = vadd.f32 %v1839_v40, %v1093_v3  ;;  %v2502_v37 = vpop.f32.mrb[2].mxu0 }
 0x193   : > { %v1927_v12 = vadd.f32 %v2519_v13, %v3469_v54  ;;  %v2521_v56 = vadd.f32 %v2502_v37, %v2402_v27  ;;  %v1842_v57 = vpop.f32.mrb[3].mxu0 }
 0x194   : > { %v1925_v61 = vadd.f32 %v2520_v33, %v3469_v54  ;;  %v2522_v10 = vadd.f32 %v1842_v57, %v1096_v11 }
 0x195   : > { %1943 = vst [vmem:[%s3474_s26 + $0x10] sm:$0xff] %v1927_v12  ;;  %v1928_v58 = vadd.f32 %v2521_v56, %v3469_v54 }
 0x196   : > { %1941 = vst [vmem:[%s3474_s26] sm:$0xff] %v1925_v61  ;;  %v1926_v16 = vadd.f32 %v2522_v10, %v3469_v54 }
 0x197   : > { %1944 = vst [vmem:[%s3474_s26 + $0x18] sm:$0xff] %v1928_v58 }
 0x198   : > { %1942 = vst [vmem:[%s3474_s26 + $0x8] sm:$0xff] %v1926_v16  ;;  %v2505_v14 = vpop.f32.mrb[4].mxu0 }
 0x199   : > { %v2523_v19 = vadd.f32 %v2505_v14, %v2405_v30  ;;  %v1855_v50 = vpop.f32.mrb[5].mxu0 }
 0x19a   : > { %v2524_v63 = vadd.f32 %v1855_v50, %v1109_v62  ;;  %v2506_v24 = vpop.f32.mrb[6].mxu0 }
 0x19b   : > { %v1931_v34 = vadd.f32 %v2523_v19, %v3469_v54  ;;  %v2525_v59 = vadd.f32 %v2506_v24, %v2406_v8  ;;  %v1858_v26 = vpop.f32.mrb[7].mxu0 }
 0x19c   : > { %v1929_v6 = vadd.f32 %v2524_v63, %v3469_v54  ;;  %v2526_v18 = vadd.f32 %v1858_v26, %v1112_v48 }
 0x19d   : > { %1947 = vst [vmem:[%s3474_s26 + $0x30] sm:$0xff] %v1931_v34  ;;  %v1932_v20 = vadd.f32 %v2525_v59, %v3469_v54 }
 0x19e   : > { %1945 = vst [vmem:[%s3474_s26 + $0x20] sm:$0xff] %v1929_v6  ;;  %v1930_v46 = vadd.f32 %v2526_v18, %v3469_v54 }
 0x19f   : > { %1948 = vst [vmem:[%s3474_s26 + $0x38] sm:$0xff] %v1932_v20 }
 0x1a0   : > { %1946 = vst [vmem:[%s3474_s26 + $0x28] sm:$0xff] %v1930_v46  ;;  %v2509_v51 = vpop.f32.mrb[8].mxu0 }
 0x1a1   : > { %v2429_v2 = vpop.f32.mrb[8].mxu1  ;;  %v1871_v7 = vpop.f32.mrb[9].mxu0 }
 0x1a2   : > { %v2527_v38 = vadd.f32 %v2509_v51, %v2429_v2  ;;  %v1285_v4 = vpop.f32.mrb[9].mxu1  ;;  %v2510_v5 = vpop.f32.mrb[10].mxu0 }
 0x1a3   : > { %v2528_v55 = vadd.f32 %v1871_v7, %v1285_v4  ;;  %v2430_v15 = vpop.f32.mrb[10].mxu1  ;;  %v1874_v44 = vpop.f32.mrb[11].mxu0 }
 0x1a4   : > { %v1935_v0 = vadd.f32 %v2527_v38, %v3469_v54  ;;  %v2529_v32 = vadd.f32 %v2510_v5, %v2430_v15  ;;  %v1288_v21 = vpop.f32.mrb[11].mxu1 }
 0x1a5   : > { %v1933_v53 = vadd.f32 %v2528_v55, %v3469_v54  ;;  %v2530_v35 = vadd.f32 %v1874_v44, %v1288_v21 }
 0x1a6   : > { %1951 = vst [vmem:[%s3474_s26 + $0x50] sm:$0xff] %v1935_v0  ;;  %v1936_v25 = vadd.f32 %v2529_v32, %v3469_v54 }
 0x1a7   : > { %1949 = vst [vmem:[%s3474_s26 + $0x40] sm:$0xff] %v1933_v53  ;;  %v1934_v23 = vadd.f32 %v2530_v35, %v3469_v54 }
 0x1a8   : > { %1952 = vst [vmem:[%s3474_s26 + $0x58] sm:$0xff] %v1936_v25  ;;  %v2513_v28 = vpop.f32.mrb[12].mxu0 }
 0x1a9   : > { %1950 = vst [vmem:[%s3474_s26 + $0x48] sm:$0xff] %v1934_v23  ;;  %v2433_v39 = vpop.f32.mrb[12].mxu1  ;;  %v1887_v42 = vpop.f32.mrb[13].mxu0 }
 0x1aa   : > { %v2531_v31 = vadd.f32 %v2513_v28, %v2433_v39  ;;  %v1301_v36 = vpop.f32.mrb[13].mxu1  ;;  %v2514_v43 = vpop.f32.mrb[14].mxu0 }
 0x1ab   : > { %v2532_v45 = vadd.f32 %v1887_v42, %v1301_v36  ;;  %v2434_v49 = vpop.f32.mrb[14].mxu1  ;;  %v1890_v9 = vpop.f32.mrb[15].mxu0 }
 0x1ac   : > { %v1939_v60 = vadd.f32 %v2531_v31, %v3469_v54  ;;  %v2533_v29 = vadd.f32 %v2514_v43, %v2434_v49  ;;  %v1304_v47 = vpop.f32.mrb[15].mxu1 }
 0x1ad   : > { %v1937_v17 = vadd.f32 %v2532_v45, %v3469_v54  ;;  %v2534_v41 = vadd.f32 %v1890_v9, %v1304_v47 }
 0x1ae   : > { %1955 = vst [vmem:[%s3474_s26 + $0x70] sm:$0xff] %v1939_v60  ;;  %v1940_v22 = vadd.f32 %v2533_v29, %v3469_v54 }
 0x1af   : > { %1953 = vst [vmem:[%s3474_s26 + $0x60] sm:$0xff] %v1937_v17  ;;  %v1938_v1 = vadd.f32 %v2534_v41, %v3469_v54 }
 0x1b0   : > { %1956 = vst [vmem:[%s3474_s26 + $0x78] sm:$0xff] %v1940_v22 }
 0x1b1   : > { %1954 = vst [vmem:[%s3474_s26 + $0x68] sm:$0xff] %v1938_v1 }
 0x1b2 PF: > { %s14_s16 = sadd.s32 1, %s2798_s16   ;;  %s3539_s12 = smov %s2790_s14 }
 0x1b3   : > { %p11_p9 = scmp.ge.s32.totalorder %s14_s16, 6   ;;  %s3540_s13 = smov %s2794_s15 }
 0x1b4   : > { %s3541_s14 = smov %s3544_s18  ;;  %s3542_s15 = smov %s3548_s19 }
 0x1b5   :  { %13 = sbr.rel (!%p11_p9) target bundleno = 3 (0x3), region = 75 }
 0x1bc   :  { %1989 = vsyncpa [#allocation3], 1 }
 0x1bd   :  { %1991 = vsyncpa [#allocation3 + $0x1], 1 }

</bundles_post_ra>
